<compile_context>
chip_gen: v6e
topology: v6e:2x2x1
jax: 0.10.0
libtpu: 0.0.40
codegen_flags: <defaults>
</compile_context>

<pallas_src>
import numpy as np
import jax
import jax.numpy as jnp
from jax.experimental import pallas as pl
from jax.experimental.pallas import tpu as pltpu

NMID = 10
NJOINTS = 20


def make_unpool_weight_np() -> np.ndarray:
    """Deterministically build the (nmid=10, njoints=20) unpool weight."""
    LeftHip = [0, 14, 15]
    LeftLeg = [14, 15, 16]
    RightHip = [0, 16, 17]
    RightLeg = [17, 18, 19]
    Back = [0, 1, 2, 3]
    Neck = [3, 4, 5]
    LeftShoulder = [3, 6, 7]
    LeftArm = [7, 8, 9]
    RightShoulder = [3, 10, 11]
    RightArm = [11, 12, 13]
    groups = [LeftHip, LeftLeg, RightHip, RightLeg, Back,
              Neck, LeftShoulder, LeftArm, RightShoulder, RightArm]
    w = np.zeros((NMID, NJOINTS), dtype=np.float32)
    for i, g in enumerate(groups):
        w[i, g] = 1.0
    w = w / np.sum(w, axis=0, keepdims=True)  # column-normalize
    return w


def make_unpool_weight() -> jnp.ndarray:
    return jnp.asarray(make_unpool_weight_np(), dtype=jnp.float32)


def _default_fold_factor() -> int:
    """R=32 -> 640-lane (5x128) output on v6e/v7x; R=16 on v5e so the
    R-replicated f32 matmul stays comfortably under the HBM roofline."""
    try:
        kind = jax.devices()[0].device_kind.lower()
    except Exception:
        return 32
    if ("v5 lite" in kind) or ("v5lite" in kind) or ("v5e" in kind):
        return 16
    return 32


def _unpool_kernel(x_ref, w_ref, o_ref):
    # x_ref: (tg, R*10) folded row tile; w_ref: (R*10, R*20) block-diagonal
    # weight (constant index_map -> DMA elided after the first grid step);
    # o_ref: (tg, R*20).  One MXU matmul; op remains HBM-bandwidth bound.
    o_ref[...] = jnp.dot(
        x_ref[...], w_ref[...], preferred_element_type=jnp.float32
    ).astype(o_ref.dtype)


def unpool_mid_to_joint(x: jnp.ndarray, weight: jnp.ndarray, *,
                        fold: int | None = None,
                        rows_per_step: int = 65536) -> jnp.ndarray:
    """x: (N, C, T, V=10) float32; weight: (10, 20). Returns (N, C, T, 20)."""
    N, C, T, V = x.shape
    assert V == NMID, f"expected V={NMID}, got {V}"
    assert weight.shape == (NMID, NJOINTS), f"bad weight shape {weight.shape}"
    W = NJOINTS

    R = _default_fold_factor() if fold is None else int(fold)
    M = N * C * T

    # Contiguous row-major reshape (no HBM copy); pad rows to a multiple of R
    # only when needed (ragged tail), then fold rows into the lane axis.
    x2d = x.reshape(M, V)
    Mp = ((M + R - 1) // R) * R
    if Mp != M:
        x2d = jnp.pad(x2d, ((0, Mp - M), (0, 0)))
    Mg = Mp // R
    xf = x2d.reshape(Mg, R * V)

    # Block-diagonal replica of the (10, 20) weight: (R*10, R*20).
    wf = jnp.kron(jnp.eye(R, dtype=jnp.float32), weight.astype(jnp.float32))

    # Folded-row tile sizing:
    #   * target ~rows_per_step original rows per grid step (~120 B/row of
    #     in+out HBM traffic) so the fixed ~0.35 us per-step overhead is noise;
    #   * keep >= 2 grid steps when possible so v7x's 2 TensorCores share work;
    #   * sublane-align (multiple of 8) or use the full extent for tiny M.
    tg = max(1, rows_per_step // R)
    if Mg >= 16:
        half = (((Mg + 1) // 2) + 7) // 8 * 8
        tg = min(tg, half)
    if Mg >= 8:
        tg = max(8, min(tg, Mg))
        tg = (tg // 8) * 8          # ragged last block is masked by Pallas
    else:
        tg = Mg                     # full-extent block for tiny inputs
    grid = (pl.cdiv(Mg, tg),)

    cost = pl.CostEstimate(
        flops=2 * Mg * (R * V) * (R * W),
        transcendentals=0,
        bytes_accessed=Mp * V * 4 + Mp * W * 4 + (R * V) * (R * W) * 4,
    )

    out_f = pl.pallas_call(
        _unpool_kernel,
        out_shape=jax.ShapeDtypeStruct((Mg, R * W), x.dtype),
        grid_spec=pltpu.PrefetchScalarGridSpec(
            num_scalar_prefetch=0,
            grid=grid,
            in_specs=[
                pl.BlockSpec((tg, R * V), lambda i: (i, 0)),
                pl.BlockSpec((R * V, R * W), lambda i: (0, 0)),
            ],
            out_specs=pl.BlockSpec((tg, R * W), lambda i: (i, 0)),
        ),
        compiler_params=pltpu.CompilerParams(
            dimension_semantics=("parallel",),
            vmem_limit_bytes=48 * 1024 * 1024,
        ),
        cost_estimate=cost,
    )(xf, wf)

    # Unfold: (Mg, R*W) -> (Mp, W) is the exact inverse of the row fold.
    out2d = out_f.reshape(Mp, W)
    if Mp != M:
        out2d = out2d[:M]
    return out2d.reshape(N, C, T, W)


if __name__ == "__main__":
    root = jax.random.PRNGKey(0)
    k1, k2, k3 = jax.random.split(root, 3)
    weight = make_unpool_weight()

    # Case 1: small shape, M = 2*4*16 = 128 (multiple of the fold factor).
    N, C, T = 2, 4, 16
    x = jax.random.normal(k1, (N, C, T, NMID), dtype=jnp.float32)
    out = jax.block_until_ready(unpool_mid_to_joint(x, weight))
    ref = jnp.einsum("nctv,vw->nctw", x, weight)
    assert out.shape == (N, C, T, NJOINTS)
    np.testing.assert_allclose(np.asarray(out), np.asarray(ref), rtol=1e-5, atol=1e-5)

    # Case 2: ragged M (2*3*11 = 66) -> exercises the pad-to-R + slice path
    # and the masked ragged row-tile inside the grid.
    N2, C2, T2 = 2, 3, 11
    x2 = jax.random.normal(k2, (N2, C2, T2, NMID), dtype=jnp.float32)
    out2 = jax.block_until_ready(unpool_mid_to_joint(x2, weight))
    ref2 = jnp.einsum("nctv,vw->nctw", x2, weight)
    assert out2.shape == (N2, C2, T2, NJOINTS)
    np.testing.assert_allclose(np.asarray(out2), np.asarray(ref2), rtol=1e-5, atol=1e-5)

    # Case 3: tiny M (1*1*3 = 3) -> single full-extent folded block (M < 8),
    # addressing the small-M edge-case concern from the review.
    N3, C3, T3 = 1, 1, 3
    x3 = jax.random.normal(k3, (N3, C3, T3, NMID), dtype=jnp.float32)
    out3 = jax.block_until_ready(unpool_mid_to_joint(x3, weight))
    ref3 = jnp.einsum("nctv,vw->nctw", x3, weight)
    assert out3.shape == (N3, C3, T3, NJOINTS)
    np.testing.assert_allclose(np.asarray(out3), np.asarray(ref3), rtol=1e-5, atol=1e-5)

    print("KERNEL_OK")
</pallas_src>

<mosaic_0001>
module attributes {stable_mosaic.version = 11 : i64} {
  func.func @_unpool_kernel(%arg0: i32, %arg1: memref<4x320xf32, #tpu.memory_space<vmem>>, %arg2: memref<320x640xf32, #tpu.memory_space<vmem>>, %arg3: memref<4x640xf32, #tpu.memory_space<vmem>>) attributes {dimension_semantics = [#tpu.dimension_semantics<parallel>], iteration_bounds = array<i64: 1>, scalar_prefetch = 0 : i64, scratch_operands = 0 : i64, tpu.core_type = #tpu.core_type<tc>, window_params = [{transform_indices = @transform_0, window_bounds = array<i64: 4, 320>}, {pipeline_mode = #tpu.pipeline_mode<synchronous>, transform_indices = @transform_1, window_bounds = array<i64: 320, 640>}, {transform_indices = @transform_2, window_bounds = array<i64: 4, 640>}]} {
    %c0 = arith.constant 0 : index
    %c0_0 = arith.constant 0 : index
    %0 = vector.load %arg1[%c0, %c0_0] : memref<4x320xf32, #tpu.memory_space<vmem>>, vector<4x320xf32>
    %c0_1 = arith.constant 0 : index
    %c0_2 = arith.constant 0 : index
    %1 = vector.load %arg2[%c0_1, %c0_2] : memref<320x640xf32, #tpu.memory_space<vmem>>, vector<320x640xf32>
    %cst = arith.constant dense<0.000000e+00> : vector<4x640xf32>
    %2 = tpu.matmul %0, %1, %cst {dimension_numbers = #tpu.dot_dimension_numbers<[1], [0], [0], [1], [0, 0, 1, 1], [], []>} : vector<4x320xf32>, vector<320x640xf32>, vector<4x640xf32> -> vector<4x640xf32>
    %c0_3 = arith.constant 0 : index
    %c0_4 = arith.constant 0 : index
    %3 = vector.load %arg3[%c0_3, %c0_4] : memref<4x640xf32, #tpu.memory_space<vmem>>, vector<4x640xf32>
    tpu.vector_store %arg3[%c0_3, %c0_4], %2 {strides = array<i32>} : memref<4x640xf32, #tpu.memory_space<vmem>>, vector<4x640xf32>,
    return
  }
  func.func @transform_0(%arg0: i32) -> (i32, i32) {
    %c0_i32 = arith.constant 0 : i32
    %c0_i32_0 = arith.constant 0 : i32
    return %arg0, %c0_i32 : i32, i32
  }
  func.func @transform_1(%arg0: i32) -> (i32, i32) {
    %c0_i32 = arith.constant 0 : i32
    %c0_i32_0 = arith.constant 0 : i32
    %c0_i32_1 = arith.constant 0 : i32
    return %c0_i32, %c0_i32_0 : i32, i32
  }
  func.func @transform_2(%arg0: i32) -> (i32, i32) {
    %c0_i32 = arith.constant 0 : i32
    %c0_i32_0 = arith.constant 0 : i32
    return %arg0, %c0_i32 : i32, i32
  }
}

</mosaic_0001>

<bundles_post_ra>
// kernel: tpu_custom_call.1
= control target key start
LH: loop header
LB: loop body
LE: loop exit
PB: predicated region body
PF: predicated region fallthrough
CT: control target
= control target key end

     0   :  { %7 = vsyncpa [#allocation3], 0  ;;  %s900_s0 = inlined_call_operand.hbm [shape: f32[4,320], index: 0, kind: input, shape index: {}]   ;;  %s901_s1 = inlined_call_operand.hbm [shape: f32[320,640], index: 1, kind: input, shape index: {}]   ;;  %s902_s2 = inlined_call_operand.hbm [shape: f32[4,640], index: 2, kind: output, shape index: {}]  }
   0x1   :  { %8 = vsyncpa [#allocation6], 0 }
   0x2   :  { %9 = vsyncpa [#allocation4], 0  ;;  %s838_s9 = smov [#allocation2]   ;;  %s839_s11 = smov [#allocation5]  }
   0x3   :  { %s16_s10 = sshll.u32 %s838_s9, 4  ;;  %s25_s12 = sshll.u32 %s839_s11, 4  ;;  %s17_s10 = int_to_ptr.vmem [resolvable:$true] %s16_s10  ;;  %s26_s12 = int_to_ptr.vmem [resolvable:$true] %s25_s12 }
   0x4   :  { %s780_s13 = scalar_lea.vmem %s17_s10, 192  ;;  %p785_p1 = scmp.lt.s32.totalorder %s17_s10, %s17_s10 }
   0x5   :  { %p781_p0 = scmp.ne.s32.totalorder %s17_s10, %s780_s13  ;;  %p786_p2 = scmp.lt.s32.totalorder %s780_s13, %s780_s13 }
   0x7   :  { %p787_p3 = por %p786_p2, %p785_p1 }
   0x9   :  { %p788_p4 = pnand %p787_p3, %p781_p0 }
   0xb   :  { %791 = shalt.err (!%p788_p4)
}
   0xc   :  { %19 = dma.hbm_to_vmem [thread:$0]  %s900_s0, 192, %s17_s10, [#allocation3]  }
   0xd   :  { %s800_s16 = scalar_lea.vmem %s26_s12, 25600  ;;  %p805_p6 = scmp.lt.s32.totalorder %s26_s12, %s26_s12 }
   0xe   :  { %p801_p5 = scmp.ne.s32.totalorder %s26_s12, %s800_s16  ;;  %p806_p7 = scmp.lt.s32.totalorder %s800_s16, %s800_s16 }
  0x10   :  { %p807_p8 = por %p806_p7, %p805_p6 }
  0x12   :  { %p808_p9 = pnand %p807_p8, %p801_p5 }
  0x14   :  { %811 = shalt.err (!%p808_p9)
}
  0x15   :  { %s840_s17 = smov 640   ;;  %s841_s18 = smov 40  }
  0x16   :  { %31 = dma.hbm_to_vmem [thread:$0]  %s901_s1, 25600, %s26_s12, [#allocation6], %s840_s17, %s840_s17, %s841_s18  }
  0x17   :  { %832 = dma.done.wait [#allocation3], 192  }
  0x18   :  { %833 = vsyncadd [#allocation3], 4294967104 }
  0x19   :  { %834 = dma.done.wait [#allocation6], 25600  }
  0x1a   :  { %835 = vsyncadd [#allocation6], 4294941696  ;;  %v842_v0 = vmov 0.0   ;;  %v116_v1 = vld [vmem:[#allocation5 + $0x260] sm:$0xff]  ;;  %v115_v3 = vld [vmem:[#allocation5 + $0x258] sm:$0xff]  ;;  %vm244_vm0 = vcmask 523264  }
  0x1b   :  { %382 = vmatprep.mubr.f32.mxu1 %v842_v0  ;;  %v236_v2 = vld [vmem:[#allocation5 + $0x620] sm:$0xff]  ;;  %247 = vmatprep.subr.mxu0 %v116_v1  ;;  %v235_v4 = vld [vmem:[#allocation5 + $0x618] sm:$0xff]  ;;  %v110_v7 = vld [vmem:[#allocation5 + $0x230] sm:$0xff]  ;;  %vm843_vm1 = vmmov 0   ;;  %s844_s0 = smov [#allocation7]  }
  0x1c   :  { %334 = vmatprep.subr.mxu1 %v236_v2  ;;  %v111_v5 = vld [vmem:[#allocation5 + $0x238] sm:$0xff]  ;;  %248 = vmatpush1.msra.mxu0 %v115_v3  ;;  %v230_v8 = vld [vmem:[#allocation5 + $0x5f0] sm:$0xff]  ;;  %v105_v11 = vld [vmem:[#allocation5 + $0x208] sm:$0xff]  ;;  %s688_s1 = sshll.u32 %s844_s0, 4  ;;  %s689_s1 = int_to_ptr.vmem [resolvable:$true] %s688_s1 }
  0x1d   :  { %v231_v6 = vld [vmem:[#allocation5 + $0x5f8] sm:$0xff]  ;;  %335 = vmatpush1.msra.mxu1 %v235_v4  ;;  %v106_v9 = vld [vmem:[#allocation5 + $0x210] sm:$0xff]  ;;  %249 = vmatprep.subr.mxu0 %v111_v5  ;;  %v225_v12 = vld [vmem:[#allocation5 + $0x5c8] sm:$0xff]  ;;  %s812_s21 = scalar_lea.vmem %s689_s1, 320  ;;  %p817_p11 = scmp.lt.s32.totalorder %s689_s1, %s689_s1 }
  0x1e   :  { %336 = vmatprep.subr.mxu1 %v231_v6  ;;  %v226_v10 = vld [vmem:[#allocation5 + $0x5d0] sm:$0xff]  ;;  %250 = vmatpush1.msra.mxu0 %v110_v7  ;;  %v101_v13 = vld [vmem:[#allocation5 + $0x1e8] sm:$0xff]  ;;  %v100_v15 = vld [vmem:[#allocation5 + $0x1e0] sm:$0xff]  ;;  %p813_p10 = scmp.ne.s32.totalorder %s689_s1, %s812_s21  ;;  %p818_p12 = scmp.lt.s32.totalorder %s812_s21, %s812_s21 }
  0x1f   :  { %337 = vmatpush1.msra.mxu1 %v230_v8  ;;  %v221_v14 = vld [vmem:[#allocation5 + $0x5a8] sm:$0xff]  ;;  %251 = vmatprep.subr.mxu0 %v106_v9  ;;  %v220_v16 = vld [vmem:[#allocation5 + $0x5a0] sm:$0xff]  ;;  %v95_v19 = vld [vmem:[#allocation5 + $0x1b8] sm:$0xff] }
  0x20   :  { %338 = vmatprep.subr.mxu1 %v226_v10  ;;  %252 = vmatpush1.msra.mxu0 %v105_v11  ;;  %v96_v17 = vld [vmem:[#allocation5 + $0x1c0] sm:$0xff]  ;;  %v215_v20 = vld [vmem:[#allocation5 + $0x578] sm:$0xff]  ;;  %v90_v23 = vld [vmem:[#allocation5 + $0x190] sm:$0xff]  ;;  %p819_p13 = por %p818_p12, %p817_p11 }
  0x21   :  { %339 = vmatpush1.msra.mxu1 %v225_v12  ;;  %v216_v18 = vld [vmem:[#allocation5 + $0x580] sm:$0xff]  ;;  %253 = vmatprep.subr.mxu0 %v101_v13  ;;  %v91_v21 = vld [vmem:[#allocation5 + $0x198] sm:$0xff]  ;;  %v210_v24 = vld [vmem:[#allocation5 + $0x550] sm:$0xff] }
  0x22   :  { %340 = vmatprep.subr.mxu1 %v221_v14  ;;  %254 = vmatpush1.msra.mxu0 %v100_v15  ;;  %v211_v22 = vld [vmem:[#allocation5 + $0x558] sm:$0xff]  ;;  %v86_v25 = vld [vmem:[#allocation5 + $0x170] sm:$0xff]  ;;  %v85_v27 = vld [vmem:[#allocation5 + $0x168] sm:$0xff]  ;;  %p820_p0 = pnand %p819_p13, %p813_p10 }
  0x23   :  { %341 = vmatpush1.msra.mxu1 %v220_v16  ;;  %255 = vmatprep.subr.mxu0 %v96_v17  ;;  %v206_v26 = vld [vmem:[#allocation5 + $0x530] sm:$0xff]  ;;  %v205_v28 = vld [vmem:[#allocation5 + $0x528] sm:$0xff]  ;;  %v80_v31 = vld [vmem:[#allocation5 + $0x140] sm:$0xff] }
  0x24   :  { %342 = vmatprep.subr.mxu1 %v216_v18  ;;  %256 = vmatpush1.msra.mxu0 %v95_v19  ;;  %v81_v29 = vld [vmem:[#allocation5 + $0x148] sm:$0xff]  ;;  %v200_v32 = vld [vmem:[#allocation5 + $0x500] sm:$0xff]  ;;  %v118_v34 = vld [vmem:[#allocation5 + $0x270] sm:$0xff] }
  0x25   :  { %343 = vmatpush1.msra.mxu1 %v215_v20  ;;  %257 = vmatprep.subr.mxu0 %v91_v21  ;;  %v201_v30 = vld [vmem:[#allocation5 + $0x508] sm:$0xff]  ;;  %v76_v33 = vld [vmem:[#allocation5 + $0x120] sm:$0xff]  ;;  %v75_v35 = vld [vmem:[#allocation5 + $0x118] sm:$0xff] }
  0x26   :  { %344 = vmatprep.subr.mxu1 %v211_v22  ;;  %258 = vmatpush1.msra.mxu0 %v90_v23  ;;  %v867_v36 = vld [vmem:[#allocation2 + $0x8] sm:$0xf]  ;;  %v117_v37 = vld [vmem:[#allocation5 + $0x268] sm:$0xff]  ;;  %v70_v40 = vld [vmem:[#allocation5 + $0xf0] sm:$0xff] }
  0x27   :  { %345 = vmatpush1.msra.mxu1 %v210_v24  ;;  %259 = vmatprep.subr.mxu0 %v86_v25  ;;  %v71_v38 = vld [vmem:[#allocation5 + $0xf8] sm:$0xff]  ;;  %v113_v39 = vld [vmem:[#allocation5 + $0x248] sm:$0xff]  ;;  %v112_v41 = vld [vmem:[#allocation5 + $0x240] sm:$0xff] }
  0x28   :  { %346 = vmatprep.subr.mxu1 %v206_v26  ;;  %260 = vmatpush1.msra.mxu0 %v85_v27  ;;  %v66_v42 = vld [vmem:[#allocation5 + $0xd0] sm:$0xff]  ;;  %v108_v43 = vld [vmem:[#allocation5 + $0x220] sm:$0xff]  ;;  %v65_v44 = vld [vmem:[#allocation5 + $0xc8] sm:$0xff] }
  0x29   :  { %347 = vmatpush1.msra.mxu1 %v205_v28  ;;  %261 = vmatprep.subr.mxu0 %v81_v29  ;;  %v107_v45 = vld [vmem:[#allocation5 + $0x218] sm:$0xff]  ;;  %v61_v46 = vld [vmem:[#allocation5 + $0xa8] sm:$0xff]  ;;  %v60_v48 = vld [vmem:[#allocation5 + $0xa0] sm:$0xff] }
  0x2a   :  { %348 = vmatprep.subr.mxu1 %v201_v30  ;;  %262 = vmatpush1.msra.mxu0 %v80_v31  ;;  %v103_v47 = vld [vmem:[#allocation5 + $0x1f8] sm:$0xff]  ;;  %v102_v49 = vld [vmem:[#allocation5 + $0x1f0] sm:$0xff]  ;;  %v56_v50 = vld [vmem:[#allocation5 + $0x80] sm:$0xff] }
  0x2b   :  { %349 = vmatpush1.msra.mxu1 %v200_v32  ;;  %263 = vmatprep.subr.mxu0 %v76_v33  ;;  %v98_v51 = vld [vmem:[#allocation5 + $0x1d0] sm:$0xff]  ;;  %v55_v52 = vld [vmem:[#allocation5 + $0x78] sm:$0xff]  ;;  %v97_v53 = vld [vmem:[#allocation5 + $0x1c8] sm:$0xff] }
  0x2c   :  { %389 = vmatprep.subr.mxu1 %v118_v34  ;;  %264 = vmatpush1.msra.mxu0 %v75_v35  ;;  %v51_v54 = vld [vmem:[#allocation5 + $0x58] sm:$0xff]  ;;  %v93_v55 = vld [vmem:[#allocation5 + $0x1a8] sm:$0xff]  ;;  %v50_v56 = vld [vmem:[#allocation5 + $0x50] sm:$0xff] }
  0x2d   :  { %698 = vmatmul.mubr.msk.f32.vlgmr.msra.gmra.mxu1 %vm244_vm0, %v867_v36  ;;  %265 = vmatprep.subr.mxu0 %v71_v38  ;;  %v92_v57 = vld [vmem:[#allocation5 + $0x1a0] sm:$0xff]  ;;  %v46_v58 = vld [vmem:[#allocation5 + $0x30] sm:$0xff]  ;;  %v45_v60 = vld [vmem:[#allocation5 + $0x28] sm:$0xff] }
  0x2e   :  { %390 = vmatpush1.msra.mxu1 %v117_v37  ;;  %266 = vmatpush1.msra.mxu0 %v70_v40  ;;  %v88_v59 = vld [vmem:[#allocation5 + $0x180] sm:$0xff]  ;;  %v87_v61 = vld [vmem:[#allocation5 + $0x178] sm:$0xff]  ;;  %v41_v62 = vld [vmem:[#allocation5 + $0x8] sm:$0xff] }
  0x2f   :  { %391 = vmatprep.subr.mxu1 %v113_v39  ;;  %267 = vmatprep.subr.mxu0 %v66_v42  ;;  %v83_v63 = vld [vmem:[#allocation5 + $0x158] sm:$0xff]  ;;  %v40_v1 = vld [vmem:[#allocation5] sm:$0xff]  ;;  %v82_v2 = vld [vmem:[#allocation5 + $0x150] sm:$0xff] }
  0x30   :  { %392 = vmatpush1.msra.mxu1 %v112_v41  ;;  %268 = vmatpush1.msra.mxu0 %v65_v44  ;;  %v196_v3 = vld [vmem:[#allocation5 + $0x4e0] sm:$0xff]  ;;  %v78_v4 = vld [vmem:[#allocation5 + $0x130] sm:$0xff]  ;;  %v195_v5 = vld [vmem:[#allocation5 + $0x4d8] sm:$0xff] }
  0x31   :  { %393 = vmatprep.subr.mxu1 %v108_v43  ;;  %269 = vmatprep.subr.mxu0 %v61_v46  ;;  %v77_v6 = vld [vmem:[#allocation5 + $0x128] sm:$0xff]  ;;  %v191_v7 = vld [vmem:[#allocation5 + $0x4b8] sm:$0xff]  ;;  %v190_v9 = vld [vmem:[#allocation5 + $0x4b0] sm:$0xff] }
  0x32   :  { %394 = vmatpush1.msra.mxu1 %v107_v45  ;;  %270 = vmatpush1.msra.mxu0 %v60_v48  ;;  %v73_v8 = vld [vmem:[#allocation5 + $0x108] sm:$0xff]  ;;  %v72_v10 = vld [vmem:[#allocation5 + $0x100] sm:$0xff]  ;;  %v186_v11 = vld [vmem:[#allocation5 + $0x490] sm:$0xff] }
  0x33   :  { %395 = vmatprep.subr.mxu1 %v103_v47  ;;  %271 = vmatprep.subr.mxu0 %v56_v50  ;;  %v68_v12 = vld [vmem:[#allocation5 + $0xe0] sm:$0xff]  ;;  %v185_v13 = vld [vmem:[#allocation5 + $0x488] sm:$0xff]  ;;  %v67_v14 = vld [vmem:[#allocation5 + $0xd8] sm:$0xff] }
  0x34   :  { %396 = vmatpush1.msra.mxu1 %v102_v49  ;;  %272 = vmatpush1.msra.mxu0 %v55_v52  ;;  %v181_v15 = vld [vmem:[#allocation5 + $0x468] sm:$0xff]  ;;  %v63_v16 = vld [vmem:[#allocation5 + $0xb8] sm:$0xff]  ;;  %v180_v17 = vld [vmem:[#allocation5 + $0x460] sm:$0xff] }
  0x35   :  { %397 = vmatprep.subr.mxu1 %v98_v51  ;;  %273 = vmatprep.subr.mxu0 %v51_v54  ;;  %v62_v18 = vld [vmem:[#allocation5 + $0xb0] sm:$0xff]  ;;  %v176_v19 = vld [vmem:[#allocation5 + $0x440] sm:$0xff]  ;;  %v175_v21 = vld [vmem:[#allocation5 + $0x438] sm:$0xff] }
  0x36   :  { %398 = vmatpush1.msra.mxu1 %v97_v53  ;;  %274 = vmatpush1.msra.mxu0 %v50_v56  ;;  %v58_v20 = vld [vmem:[#allocation5 + $0x90] sm:$0xff]  ;;  %v57_v22 = vld [vmem:[#allocation5 + $0x88] sm:$0xff]  ;;  %v171_v23 = vld [vmem:[#allocation5 + $0x418] sm:$0xff] }
  0x37   :  { %399 = vmatprep.subr.mxu1 %v93_v55  ;;  %275 = vmatprep.subr.mxu0 %v46_v58  ;;  %v53_v24 = vld [vmem:[#allocation5 + $0x68] sm:$0xff]  ;;  %v170_v25 = vld [vmem:[#allocation5 + $0x410] sm:$0xff]  ;;  %v52_v26 = vld [vmem:[#allocation5 + $0x60] sm:$0xff] }
  0x38   :  { %400 = vmatpush1.msra.mxu1 %v92_v57  ;;  %276 = vmatpush1.msra.mxu0 %v45_v60  ;;  %v166_v27 = vld [vmem:[#allocation5 + $0x3f0] sm:$0xff]  ;;  %v48_v28 = vld [vmem:[#allocation5 + $0x40] sm:$0xff]  ;;  %v165_v29 = vld [vmem:[#allocation5 + $0x3e8] sm:$0xff] }
  0x39   :  { %401 = vmatprep.subr.mxu1 %v88_v59  ;;  %277 = vmatprep.subr.mxu0 %v41_v62  ;;  %v47_v30 = vld [vmem:[#allocation5 + $0x38] sm:$0xff]  ;;  %v161_v31 = vld [vmem:[#allocation5 + $0x3c8] sm:$0xff]  ;;  %v160_v33 = vld [vmem:[#allocation5 + $0x3c0] sm:$0xff] }
  0x3a   :  { %402 = vmatpush1.msra.mxu1 %v87_v61  ;;  %278 = vmatpush1.msra.mxu0 %v40_v1  ;;  %v43_v32 = vld [vmem:[#allocation5 + $0x18] sm:$0xff]  ;;  %v42_v34 = vld [vmem:[#allocation5 + $0x10] sm:$0xff]  ;;  %v156_v35 = vld [vmem:[#allocation5 + $0x3a0] sm:$0xff] }
  0x3b   :  { %403 = vmatprep.subr.mxu1 %v83_v63  ;;  %279 = vmatprep.subr.mxu0 %v196_v3  ;;  %v198_v37 = vld [vmem:[#allocation5 + $0x4f0] sm:$0xff]  ;;  %v155_v38 = vld [vmem:[#allocation5 + $0x398] sm:$0xff]  ;;  %v197_v39 = vld [vmem:[#allocation5 + $0x4e8] sm:$0xff] }
  0x3c   :  { %404 = vmatpush1.msra.mxu1 %v82_v2  ;;  %280 = vmatpush2.msra.mxu0 %v195_v5  ;;  %v151_v40 = vld [vmem:[#allocation5 + $0x378] sm:$0xff]  ;;  %v193_v41 = vld [vmem:[#allocation5 + $0x4c8] sm:$0xff]  ;;  %v150_v42 = vld [vmem:[#allocation5 + $0x370] sm:$0xff] }
  0x3d   :  { %405 = vmatprep.subr.mxu1 %v78_v4  ;;  %281 = vmatprep.subr.mxu0 %v191_v7  ;;  %v192_v43 = vld [vmem:[#allocation5 + $0x4c0] sm:$0xff]  ;;  %v146_v44 = vld [vmem:[#allocation5 + $0x350] sm:$0xff]  ;;  %v145_v46 = vld [vmem:[#allocation5 + $0x348] sm:$0xff] }
  0x3e   :  { %406 = vmatpush1.msra.mxu1 %v77_v6  ;;  %282 = vmatpush2.msra.mxu0 %v190_v9  ;;  %v188_v45 = vld [vmem:[#allocation5 + $0x4a0] sm:$0xff]  ;;  %v187_v47 = vld [vmem:[#allocation5 + $0x498] sm:$0xff]  ;;  %v141_v48 = vld [vmem:[#allocation5 + $0x328] sm:$0xff] }
  0x3f   :  { %407 = vmatprep.subr.mxu1 %v73_v8  ;;  %283 = vmatprep.subr.mxu0 %v186_v11  ;;  %v183_v49 = vld [vmem:[#allocation5 + $0x478] sm:$0xff]  ;;  %v140_v50 = vld [vmem:[#allocation5 + $0x320] sm:$0xff]  ;;  %v182_v51 = vld [vmem:[#allocation5 + $0x470] sm:$0xff] }
  0x40   :  { %408 = vmatpush1.msra.mxu1 %v72_v10  ;;  %284 = vmatpush2.msra.mxu0 %v185_v13  ;;  %v136_v52 = vld [vmem:[#allocation5 + $0x300] sm:$0xff]  ;;  %v178_v53 = vld [vmem:[#allocation5 + $0x450] sm:$0xff]  ;;  %v135_v54 = vld [vmem:[#allocation5 + $0x2f8] sm:$0xff] }
  0x41   :  { %409 = vmatprep.subr.mxu1 %v68_v12  ;;  %285 = vmatprep.subr.mxu0 %v181_v15  ;;  %v177_v55 = vld [vmem:[#allocation5 + $0x448] sm:$0xff]  ;;  %v131_v56 = vld [vmem:[#allocation5 + $0x2d8] sm:$0xff]  ;;  %v130_v58 = vld [vmem:[#allocation5 + $0x2d0] sm:$0xff] }
  0x42   :  { %410 = vmatpush1.msra.mxu1 %v67_v14  ;;  %286 = vmatpush2.msra.mxu0 %v180_v17  ;;  %v173_v57 = vld [vmem:[#allocation5 + $0x428] sm:$0xff]  ;;  %v172_v59 = vld [vmem:[#allocation5 + $0x420] sm:$0xff]  ;;  %v126_v60 = vld [vmem:[#allocation5 + $0x2b0] sm:$0xff] }
  0x43   :  { %411 = vmatprep.subr.mxu1 %v63_v16  ;;  %287 = vmatprep.subr.mxu0 %v176_v19  ;;  %v871_v61 = vld [vmem:[#allocation2] sm:$0xff]  ;;  %v168_v62 = vld [vmem:[#allocation5 + $0x400] sm:$0xff]  ;;  %v125_v63 = vld [vmem:[#allocation5 + $0x2a8] sm:$0xff] }
  0x44   :  { %412 = vmatpush1.msra.mxu1 %v62_v18  ;;  %288 = vmatpush2.msra.mxu0 %v175_v21  ;;  %v167_v1 = vld [vmem:[#allocation5 + $0x3f8] sm:$0xff]  ;;  %v121_v2 = vld [vmem:[#allocation5 + $0x288] sm:$0xff]  ;;  %v120_v4 = vld [vmem:[#allocation5 + $0x280] sm:$0xff]  ;;  %v875_v5 = vcombine.high %v871_v61, %v871_v61 }
  0x45   :  { %413 = vmatprep.subr.mxu1 %v58_v20  ;;  %289 = vmatprep.subr.mxu0 %v171_v23  ;;  %v163_v3 = vld [vmem:[#allocation5 + $0x3d8] sm:$0xff]  ;;  %v162_v6 = vld [vmem:[#allocation5 + $0x3d0] sm:$0xff]  ;;  %v157_v9 = vld [vmem:[#allocation5 + $0x3a8] sm:$0xff] }
  0x46   :  { %414 = vmatpush1.msra.mxu1 %v57_v22  ;;  %290 = vmatpush2.msra.mxu0 %v170_v25  ;;  %v158_v7 = vld [vmem:[#allocation5 + $0x3b0] sm:$0xff]  ;;  %v237_v10 = vld [vmem:[#allocation5 + $0x628] sm:$0xff]  ;;  %v152_v13 = vld [vmem:[#allocation5 + $0x380] sm:$0xff] }
  0x47   :  { %415 = vmatprep.subr.mxu1 %v53_v24  ;;  %291 = vmatprep.subr.mxu0 %v166_v27  ;;  %v238_v8 = vld [vmem:[#allocation5 + $0x630] sm:$0xff]  ;;  %v153_v11 = vld [vmem:[#allocation5 + $0x388] sm:$0xff]  ;;  %v232_v14 = vld [vmem:[#allocation5 + $0x600] sm:$0xff] }
  0x48   :  { %416 = vmatpush1.msra.mxu1 %v52_v26  ;;  %292 = vmatpush2.msra.mxu0 %v165_v29  ;;  %v233_v12 = vld [vmem:[#allocation5 + $0x608] sm:$0xff]  ;;  %v148_v15 = vld [vmem:[#allocation5 + $0x360] sm:$0xff]  ;;  %v147_v17 = vld [vmem:[#allocation5 + $0x358] sm:$0xff] }
  0x49   :  { %417 = vmatprep.subr.mxu1 %v48_v28  ;;  %293 = vmatprep.subr.mxu0 %v161_v31  ;;  %v228_v16 = vld [vmem:[#allocation5 + $0x5e0] sm:$0xff]  ;;  %v227_v18 = vld [vmem:[#allocation5 + $0x5d8] sm:$0xff]  ;;  %v142_v21 = vld [vmem:[#allocation5 + $0x330] sm:$0xff] }
  0x4a   :  { %418 = vmatpush1.msra.mxu1 %v47_v30  ;;  %294 = vmatpush2.msra.mxu0 %v160_v33  ;;  %v143_v19 = vld [vmem:[#allocation5 + $0x338] sm:$0xff]  ;;  %v222_v22 = vld [vmem:[#allocation5 + $0x5b0] sm:$0xff]  ;;  %v137_v25 = vld [vmem:[#allocation5 + $0x308] sm:$0xff] }
  0x4b   :  { %419 = vmatprep.subr.mxu1 %v43_v32  ;;  %295 = vmatprep.subr.mxu0 %v156_v35  ;;  %v223_v20 = vld [vmem:[#allocation5 + $0x5b8] sm:$0xff]  ;;  %v138_v23 = vld [vmem:[#allocation5 + $0x310] sm:$0xff]  ;;  %v217_v26 = vld [vmem:[#allocation5 + $0x588] sm:$0xff] }
  0x4c   :  { %420 = vmatpush1.msra.mxu1 %v42_v34  ;;  %296 = vmatpush2.msra.mxu0 %v155_v38  ;;  %v218_v24 = vld [vmem:[#allocation5 + $0x590] sm:$0xff]  ;;  %v133_v27 = vld [vmem:[#allocation5 + $0x2e8] sm:$0xff]  ;;  %v132_v29 = vld [vmem:[#allocation5 + $0x2e0] sm:$0xff] }
  0x4d   :  { %421 = vmatprep.subr.mxu1 %v198_v37  ;;  %297 = vmatprep.subr.mxu0 %v151_v40  ;;  %v213_v28 = vld [vmem:[#allocation5 + $0x568] sm:$0xff]  ;;  %v212_v30 = vld [vmem:[#allocation5 + $0x560] sm:$0xff]  ;;  %v127_v33 = vld [vmem:[#allocation5 + $0x2b8] sm:$0xff] }
  0x4e   :  { %422 = vmatpush2.msra.mxu1 %v197_v39  ;;  %298 = vmatpush2.msra.mxu0 %v150_v42  ;;  %v128_v31 = vld [vmem:[#allocation5 + $0x2c0] sm:$0xff]  ;;  %v207_v34 = vld [vmem:[#allocation5 + $0x538] sm:$0xff]  ;;  %v122_v38 = vld [vmem:[#allocation5 + $0x290] sm:$0xff] }
  0x4f   :  { %423 = vmatprep.subr.mxu1 %v193_v41  ;;  %299 = vmatprep.subr.mxu0 %v146_v44  ;;  %v208_v32 = vld [vmem:[#allocation5 + $0x540] sm:$0xff]  ;;  %v123_v35 = vld [vmem:[#allocation5 + $0x298] sm:$0xff]  ;;  %v202_v39 = vld [vmem:[#allocation5 + $0x510] sm:$0xff] }
  0x50   :  { %424 = vmatpush2.msra.mxu1 %v192_v43  ;;  %300 = vmatpush2.msra.mxu0 %v145_v46  ;;  %v203_v37 = vld [vmem:[#allocation5 + $0x518] sm:$0xff]  ;;  %v194_v42 = vld [vmem:[#allocation5 + $0x4d0] sm:$0xff] }
  0x51   :  { %425 = vmatprep.subr.mxu1 %v188_v45  ;;  %301 = vmatprep.subr.mxu0 %v141_v48  ;;  %v199_v40 = vld [vmem:[#allocation5 + $0x4f8] sm:$0xff]  ;;  %v114_v44 = vld [vmem:[#allocation5 + $0x250] sm:$0xff]  ;;  %v189_v45 = vld [vmem:[#allocation5 + $0x4a8] sm:$0xff] }
  0x52   :  { %426 = vmatpush2.msra.mxu1 %v187_v47  ;;  %302 = vmatpush2.msra.mxu0 %v140_v50  ;;  %v119_v41 = vld [vmem:[#allocation5 + $0x278] sm:$0xff]  ;;  %v234_v46 = vld [vmem:[#allocation5 + $0x610] sm:$0xff]  ;;  %v109_v47 = vld [vmem:[#allocation5 + $0x228] sm:$0xff] }
  0x53   :  { %427 = vmatprep.subr.mxu1 %v183_v49  ;;  %303 = vmatprep.subr.mxu0 %v136_v52  ;;  %v239_v43 = vld [vmem:[#allocation5 + $0x638] sm:$0xff]  ;;  %v184_v48 = vld [vmem:[#allocation5 + $0x480] sm:$0xff]  ;;  %v229_v49 = vld [vmem:[#allocation5 + $0x5e8] sm:$0xff] }
  0x54   :  { %428 = vmatpush2.msra.mxu1 %v182_v51  ;;  %304 = vmatpush2.msra.mxu0 %v135_v54  ;;  %v104_v50 = vld [vmem:[#allocation5 + $0x200] sm:$0xff]  ;;  %v179_v51 = vld [vmem:[#allocation5 + $0x458] sm:$0xff]  ;;  %v174_v54 = vld [vmem:[#allocation5 + $0x430] sm:$0xff] }
  0x55   :  { %429 = vmatprep.subr.mxu1 %v178_v53  ;;  %305 = vmatprep.subr.mxu0 %v131_v56  ;;  %v224_v52 = vld [vmem:[#allocation5 + $0x5c0] sm:$0xff]  ;;  %v99_v53 = vld [vmem:[#allocation5 + $0x1d8] sm:$0xff]  ;;  %v94_v56 = vld [vmem:[#allocation5 + $0x1b0] sm:$0xff] }
  0x56   :  { %430 = vmatpush2.msra.mxu1 %v177_v55  ;;  %306 = vmatpush2.msra.mxu0 %v130_v58  ;;  %v219_v55 = vld [vmem:[#allocation5 + $0x598] sm:$0xff]  ;;  %v214_v58 = vld [vmem:[#allocation5 + $0x570] sm:$0xff] }
  0x57   :  { %431 = vmatprep.subr.mxu1 %v173_v57  ;;  %307 = vmatprep.subr.mxu0 %v126_v60  ;;  %v169_v57 = vld [vmem:[#allocation5 + $0x408] sm:$0xff]  ;;  %v164_v60 = vld [vmem:[#allocation5 + $0x3e0] sm:$0xff] }
  0x58   :  { %432 = vmatpush2.msra.mxu1 %v172_v59  ;;  %308 = vmatpush2.msra.mxu0 %v125_v63  ;;  %v89_v59 = vld [vmem:[#allocation5 + $0x188] sm:$0xff] }
  0x59   :  { %433 = vmatprep.subr.mxu1 %v168_v62  ;;  %309 = vmatprep.subr.mxu0 %v121_v2  ;;  %v84_v62 = vld [vmem:[#allocation5 + $0x160] sm:$0xff]  ;;  %v209_v63 = vld [vmem:[#allocation5 + $0x548] sm:$0xff]  ;;  %v79_v2 = vld [vmem:[#allocation5 + $0x138] sm:$0xff] }
  0x5a   :  { %434 = vmatpush2.msra.mxu1 %v167_v1  ;;  %310 = vmatpush2.msra.mxu0 %v120_v4  ;;  %v159_v1 = vld [vmem:[#allocation5 + $0x3b8] sm:$0xff]  ;;  %v154_v4 = vld [vmem:[#allocation5 + $0x390] sm:$0xff] }
  0x5b   :  { %435 = vmatprep.subr.mxu1 %v163_v3  ;;  %311 = vmatprep.mubr.f32.mxu0 %v875_v5  ;;  %v204_v3 = vld [vmem:[#allocation5 + $0x520] sm:$0xff] }
  0x5c   :  { %436 = vmatpush2.msra.mxu1 %v162_v6  ;;  %312 = vmatmul.mubr.f32.vlgmr.msra.gmra.mxu0 %v871_v61  ;;  %v74_v6 = vld [vmem:[#allocation5 + $0x110] sm:$0xff] }
  0x5d   :  { %437 = vmatprep.subr.mxu1 %v158_v7  ;;  %476 = vmatprep.subr.mxu0 %v238_v8  ;;  %v149_v7 = vld [vmem:[#allocation5 + $0x368] sm:$0xff] }
  0x5e   :  { %438 = vmatpush2.msra.mxu1 %v157_v9  ;;  %477 = vmatpush1.msra.mxu0 %v237_v10  ;;  %v69_v8 = vld [vmem:[#allocation5 + $0xe8] sm:$0xff]  ;;  %v144_v9 = vld [vmem:[#allocation5 + $0x340] sm:$0xff]  ;;  %v139_v10 = vld [vmem:[#allocation5 + $0x318] sm:$0xff] }
  0x5f   :  { %439 = vmatprep.subr.mxu1 %v153_v11  ;;  %478 = vmatprep.subr.mxu0 %v233_v12  ;;  %v59_v11 = vld [vmem:[#allocation5 + $0x98] sm:$0xff]  ;;  %v134_v12 = vld [vmem:[#allocation5 + $0x2f0] sm:$0xff] }
  0x60   :  { %440 = vmatpush2.msra.mxu1 %v152_v13  ;;  %479 = vmatpush1.msra.mxu0 %v232_v14  ;;  %v54_v13 = vld [vmem:[#allocation5 + $0x70] sm:$0xff]  ;;  %v129_v14 = vld [vmem:[#allocation5 + $0x2c8] sm:$0xff] }
  0x61   :  { %441 = vmatprep.subr.mxu1 %v148_v15  ;;  %480 = vmatprep.subr.mxu0 %v228_v16  ;;  %v49_v15 = vld [vmem:[#allocation5 + $0x48] sm:$0xff]  ;;  %v44_v16 = vld [vmem:[#allocation5 + $0x20] sm:$0xff] }
  0x62   :  { %442 = vmatpush2.msra.mxu1 %v147_v17  ;;  %481 = vmatpush1.msra.mxu0 %v227_v18 }
  0x63   :  { %443 = vmatprep.subr.mxu1 %v143_v19  ;;  %482 = vmatprep.subr.mxu0 %v223_v20 }
  0x64   :  { %444 = vmatpush2.msra.mxu1 %v142_v21  ;;  %483 = vmatpush1.msra.mxu0 %v222_v22 }
  0x65   :  { %445 = vmatprep.subr.mxu1 %v138_v23  ;;  %484 = vmatprep.subr.mxu0 %v218_v24 }
  0x66   :  { %446 = vmatpush2.msra.mxu1 %v137_v25  ;;  %485 = vmatpush1.msra.mxu0 %v217_v26 }
  0x67   :  { %447 = vmatprep.subr.mxu1 %v133_v27  ;;  %486 = vmatprep.subr.mxu0 %v213_v28 }
  0x68   :  { %448 = vmatpush2.msra.mxu1 %v132_v29  ;;  %487 = vmatpush1.msra.mxu0 %v212_v30 }
  0x69   :  { %449 = vmatprep.subr.mxu1 %v128_v31  ;;  %488 = vmatprep.subr.mxu0 %v208_v32 }
  0x6a   :  { %450 = vmatpush2.msra.mxu1 %v127_v33  ;;  %489 = vmatpush1.msra.mxu0 %v207_v34 }
  0x6b   :  { %451 = vmatprep.subr.mxu1 %v123_v35  ;;  %490 = vmatprep.subr.mxu0 %v203_v37 }
  0x6c   :  { %452 = vmatpush2.msra.mxu1 %v122_v38  ;;  %453 = vmatprep.mubr.f32.mxu1 %v875_v5 }
  0x6d   :  { %491 = vmatpush1.msra.mxu0 %v202_v39  ;;  %524 = vmatprep.mubr.f32.mxu0 %v842_v0 }
  0x6e   :  { %454 = vmatmul.mubr.f32.vlgmr.msra.gmra.mxu1 %v871_v61  ;;  %699 = vmatmul.mubr.msk.f32.vlgmr.msra.gmra.mxu0 %vm244_vm0, %v867_v36 }
  0x6f   :  { %701 = vmatprep.subr.mxu0 %v199_v40  ;;  %745 = vmatprep.subr.mxu1 %v842_v0 }
  0x70   :  { %702 = vmatpush3.msra.mxu0 %v119_v41  ;;  %746 = vmatpush3.msra.mxu1 %v239_v43 }
  0x71   :  { %703 = vmatprep.subr.mxu0 %v194_v42  ;;  %747 = vmatprep.subr.mxu1 %v842_v0 }
  0x72   :  { %704 = vmatpush3.msra.mxu0 %v114_v44  ;;  %748 = vmatpush3.msra.mxu1 %v234_v46 }
  0x73   :  { %705 = vmatprep.subr.mxu0 %v189_v45  ;;  %749 = vmatprep.subr.mxu1 %v842_v0 }
  0x74   :  { %706 = vmatpush3.msra.mxu0 %v109_v47  ;;  %750 = vmatpush3.msra.mxu1 %v229_v49 }
  0x75   :  { %707 = vmatprep.subr.mxu0 %v184_v48  ;;  %751 = vmatprep.subr.mxu1 %v842_v0 }
  0x76   :  { %708 = vmatpush3.msra.mxu0 %v104_v50  ;;  %752 = vmatpush3.msra.mxu1 %v224_v52 }
  0x77   :  { %709 = vmatprep.subr.mxu0 %v179_v51  ;;  %753 = vmatprep.subr.mxu1 %v842_v0 }
  0x78   :  { %710 = vmatpush3.msra.mxu0 %v99_v53  ;;  %754 = vmatpush3.msra.mxu1 %v219_v55 }
  0x79   :  { %711 = vmatprep.subr.mxu0 %v174_v54  ;;  %755 = vmatprep.subr.mxu1 %v842_v0 }
  0x7a   :  { %712 = vmatpush3.msra.mxu0 %v94_v56  ;;  %756 = vmatpush3.msra.mxu1 %v214_v58 }
  0x7b   :  { %713 = vmatprep.subr.mxu0 %v169_v57  ;;  %757 = vmatprep.subr.mxu1 %v842_v0 }
  0x7c   :  { %714 = vmatpush3.msra.mxu0 %v89_v59  ;;  %595 = vmatprep.mubr.f32.mxu0 %v875_v5  ;;  %v64_v5 = vld [vmem:[#allocation5 + $0xc0] sm:$0xff] }
  0x7d   :  { %715 = vmatprep.subr.mxu0 %v164_v60  ;;  %758 = vmatpush3.msra.mxu1 %v209_v63 }
  0x7e   :  { %716 = vmatpush3.msra.mxu0 %v84_v62  ;;  %759 = vmatprep.subr.mxu1 %v842_v0 }
  0x7f   :  { %717 = vmatprep.subr.mxu0 %v159_v1  ;;  %760 = vmatpush3.msra.mxu1 %v204_v3 }
  0x80   :  { %718 = vmatpush3.msra.mxu0 %v79_v2  ;;  %761 = vmatprep.mubr.msk.f32.mxu1 %vm843_vm1, %v842_v0  ;;  %v124_v0 = vld [vmem:[#allocation5 + $0x2a0] sm:$0xff] }
  0x81   :  { %719 = vmatprep.subr.mxu0 %v154_v4  ;;  %762 = vmatmul.mubr.msk.f32.vlgmr.msra.gmra.mxu1 %vm244_vm0, %v867_v36 }
  0x82   :  { %720 = vmatpush3.msra.mxu0 %v74_v6 }
  0x83   :  { %721 = vmatprep.subr.mxu0 %v149_v7 }
  0x84   :  { %722 = vmatpush3.msra.mxu0 %v69_v8 }
  0x85   :  { %723 = vmatprep.subr.mxu0 %v144_v9 }
  0x86   :  { %724 = vmatpush3.msra.mxu0 %v64_v5 }
  0x87   :  { %725 = vmatprep.subr.mxu0 %v139_v10 }
  0x88   :  { %726 = vmatpush3.msra.mxu0 %v59_v11 }
  0x89   :  { %727 = vmatprep.subr.mxu0 %v134_v12 }
  0x8a   :  { %728 = vmatpush3.msra.mxu0 %v54_v13 }
  0x8b   :  { %729 = vmatprep.subr.mxu0 %v129_v14 }
  0x8c   :  { %730 = vmatpush3.msra.mxu0 %v49_v15 }
  0x8d   :  { %731 = vmatprep.subr.mxu0 %v124_v0 }
  0x8e   :  { %732 = vmatpush3.msra.mxu0 %v44_v16 }
  0x8f   :  { %596 = vmatmul.mubr.f32.vlgmr.msra.gmra.mxu0 %v871_v61 }
  0xed   :  { %v384_v36 = vpop.f32.mrf.mxu1 }
  0xef   :  { %v386_v18 = vpop.f32.mrf.mxu1 }
 0x11c   :  { %v313_v17 = vpop.f32.mrf.mxu0 }
 0x11d   :  { %v385_v20 = vadd.f32 %v384_v36, %v313_v17 }
 0x11e   :  { %v315_v19 = vpop.f32.mrf.mxu0 }
 0x11f   :  { %v387_v21 = vadd.f32 %v386_v18, %v315_v19 }
 0x121   :  { %v675_v22 = vcombine.low %v385_v20, %v387_v21 }
 0x123   :  { %679 = vst [vmem:[#allocation7] sm:$0xff] %v675_v22 }
 0x12e   :  { %v455_v23 = vpop.f32.mrf.mxu1  ;;  %v526_v24 = vpop.f32.mrf.mxu0 }
 0x12f   :  { %v527_v25 = vadd.f32 %v526_v24, %v455_v23 }
 0x130   :  { %v457_v26 = vpop.f32.mrf.mxu1  ;;  %v528_v27 = vpop.f32.mrf.mxu0 }
 0x131   :  { %v529_v28 = vadd.f32 %v528_v27, %v457_v26 }
 0x133   :  { %v676_v29 = vcombine.low %v527_v25, %v529_v28 }
 0x135   :  { %680 = vst [vmem:[#allocation7 + $0x8] sm:$0xff] %v676_v29 }
 0x141   :  { %v667_v30 = vpop.f32.mrf.mxu1 }
 0x143   :  { %v763_v31 = vpop.f32.mrf.mxu1 }
 0x14f   :  { %v733_v32 = vpop.f32.mrf.mxu0 }
 0x151   :  { %v734_v61 = vpop.f32.mrf.mxu0 }
 0x152   :  { %v735_v33 = vadd.f32 %v734_v61, %v733_v32 }
 0x154   :  { %v668_v34 = vadd.f32 %v735_v33, %v667_v30 }
 0x156   :  { %681 = vst [vmem:[#allocation7 + $0x10] sm:$0xf] %v668_v34 }
 0x157   :  { %823 = shalt.err (!%p820_p0)
}
 0x158   :  { %691 = dma.vmem_to_hbm [thread:$0]  %s689_s1, 320, %s902_s2, [#allocation4]  }
 0x159   :  { %836 = dma.done.wait [#allocation4], 320  }
 0x15a   :  { %837 = vsyncadd [#allocation4], 4294966976 }
 0x15b   :  { %695 = vsyncpa [#allocation3], 1 }
 0x15c   :  { %696 = vsyncpa [#allocation6], 1 }
 0x15d   :  { %697 = vsyncpa [#allocation4], 1 }

</bundles_post_ra>
